<compile_context>
chip_gen: v5e
topology: v5e:2x2
jax: 0.10.0
libtpu: 0.0.40
codegen_flags: <defaults>
</compile_context>

<pallas_src>
import functools
import math

import jax
import jax.numpy as jnp
import numpy as np
from jax.experimental import pallas as pl
from jax.experimental.pallas import tpu as pltpu

_LANE = 128  # vreg lane width


def _build_pe(d_model: int, max_seq_len: int) -> np.ndarray:
    """Replicates the PyTorch __init__ loop exactly (including the quirky
    exponents 2*i/d_model for sin and 2*(i+1)/d_model for cos)."""
    assert d_model % 2 == 0, "PositionalEncoder requires an even d_model"
    pe = np.zeros((max_seq_len, d_model), dtype=np.float64)
    for pos in range(max_seq_len):
        for i in range(0, d_model, 2):
            pe[pos, i] = math.sin(pos / 10000 ** (2 * i / d_model))
            pe[pos, i + 1] = math.cos(pos / 10000 ** (2 * (i + 1) / d_model))
    return pe.astype(np.float32)


def _pos_enc_kernel(x_ref, pe_ref, o_ref, *, scale):
    # x_ref / o_ref: (TB, TC) lane-dense block; pe_ref: (1, TC), broadcast over
    # the row (batch) dim. Pure VPU elementwise work — compute is never the
    # bottleneck here, HBM bandwidth is.
    o_ref[...] = (x_ref[...] * scale + pe_ref[...]).astype(o_ref.dtype)


def _round_down(x: int, m: int) -> int:
    return (x // m) * m


def _tpu_hints():
    """Returns (target_block_bytes, num_tensorcores) tuned per generation."""
    try:
        info = pltpu.get_tpu_info()
        vmem = getattr(info, "vmem_capacity_bytes", None)
        if vmem is not None and vmem <= 80 * (1 << 20):
            # v7x: 64 MiB VMEM/TC, 2 TCs, ~3.2 TB/s HBM -> bigger blocks and a
            # 2-way split of single-tile problems so both TCs get work.
            return 4 << 20, 2
    except Exception:
        pass
    # v5e / v6e (or unknown): ~2 MiB blocks already sit near the HBM roofline
    # and stay under v5e's 16 MiB default scoped-VMEM limit even without the
    # explicit vmem_limit_bytes below.
    return 2 << 20, 1


def _choose_tiles(batch: int, cols: int, itemsize: int,
                  target_bytes: int, num_cores: int):
    """Pick (TB, TC) for the flattened (batch, cols) view so that
    TB*TC*itemsize ~= target_bytes, TC is a multiple of 128 (or full cols when
    cols < 128), and TB is a multiple of the dtype's sublane height (or full
    batch when batch is smaller). Ragged tails are handled by a cdiv grid."""
    sublane = max(8, 32 // itemsize)          # 8 f32, 16 bf16, 32 int8
    target_elems = max(sublane * _LANE, target_bytes // itemsize)

    # Expected row-tile height used to budget the column tile.
    if batch <= sublane:
        tb_goal = batch
    else:
        tb_goal = min(_round_down(batch, sublane), 8 * sublane)

    # Column (lane) tile.
    if cols <= _LANE:
        tc = cols                              # full dim (legal non-multiple)
    else:
        tc = _round_down(min(cols, max(_LANE, target_elems // tb_goal)), _LANE)

    # Row (sublane) tile, re-derived against the chosen tc.
    if batch <= sublane:
        tb = batch                             # full dim (legal non-multiple)
    else:
        tb = _round_down(min(batch, max(sublane, target_elems // tc)), sublane)

    # v7x only: split a single-block problem so both TensorCores get work
    # (both grid axes are marked "parallel").
    if num_cores > 1 and pl.cdiv(batch, tb) == 1 and pl.cdiv(cols, tc) == 1:
        if tc % (2 * _LANE) == 0:
            tc //= 2
        elif tb % (2 * sublane) == 0:
            tb //= 2
    return tb, tc


def positional_encoder(x: jax.Array, pe: jax.Array, d_model: int) -> jax.Array:
    """x: [B, S, D], pe: [max_seq_len, D] (same dtype as x)."""
    B, S, D = x.shape
    assert D == d_model, f"d_model mismatch: {D} vs {d_model}"
    assert S <= pe.shape[0], f"seq_len {S} exceeds max_seq_len {pe.shape[0]}"
    scale = math.sqrt(d_model)

    # Lane-dense flat views: stores become full-width vst even when D < 128.
    C = S * D
    x2 = x.reshape(B, C)
    pe2 = pe[:S, :].reshape(1, C).astype(x.dtype)  # row-major matches x's flatten

    target_bytes, num_cores = _tpu_hints()
    TB, TC = _choose_tiles(B, C, x.dtype.itemsize, target_bytes, num_cores)

    # Column axis OUTERMOST: pe's block index is constant across the inner
    # batch loop, so Pallas fetches each pe tile once per column stripe.
    grid = (pl.cdiv(C, TC), pl.cdiv(B, TB))

    kernel = functools.partial(_pos_enc_kernel, scale=scale)

    out2 = pl.pallas_call(
        kernel,
        out_shape=jax.ShapeDtypeStruct((B, C), x.dtype),
        grid_spec=pltpu.PrefetchScalarGridSpec(
            num_scalar_prefetch=0,
            grid=grid,
            in_specs=[
                pl.BlockSpec((TB, TC), lambda j, i: (i, j)),   # x
                pl.BlockSpec((1, TC), lambda j, i: (0, j)),    # pe (resident over i)
            ],
            out_specs=pl.BlockSpec((TB, TC), lambda j, i: (i, j)),
        ),
        compiler_params=pltpu.CompilerParams(
            dimension_semantics=("parallel", "parallel"),
            # Safe on every generation: well under v5e/v6e's 128 MiB and under
            # v7x's 64 MiB/TC with headroom; blocks are <= 4 MiB double-buffered.
            vmem_limit_bytes=48 << 20,
        ),
    )(x2, pe2)

    return out2.reshape(B, S, D)


if __name__ == "__main__":
    d_model = 32
    max_seq_len = 80
    batch = 2
    seq_len = 8

    pe = jnp.asarray(_build_pe(d_model, max_seq_len))

    key = jax.random.PRNGKey(0)
    x = jax.random.normal(key, (batch, seq_len, d_model), dtype=jnp.float32)

    out = positional_encoder(x, pe, d_model)
    out = jax.block_until_ready(out)

    # Reference check in plain JAX.
    ref = x * math.sqrt(d_model) + pe[None, :seq_len, :]
    np.testing.assert_allclose(np.asarray(out), np.asarray(ref), rtol=1e-6, atol=1e-6)

    print("KERNEL_OK")
</pallas_src>

<mosaic_0001>
module attributes {stable_mosaic.version = 11 : i64} {
  func.func @_pos_enc_kernel(%arg0: i32, %arg1: i32, %arg2: memref<2x256xf32, #tpu.memory_space<vmem>>, %arg3: memref<1x256xf32, #tpu.memory_space<vmem>>, %arg4: memref<2x256xf32, #tpu.memory_space<vmem>>) attributes {dimension_semantics = [#tpu.dimension_semantics<parallel>, #tpu.dimension_semantics<parallel>], iteration_bounds = array<i64: 1, 1>, scalar_prefetch = 0 : i64, scratch_operands = 0 : i64, tpu.core_type = #tpu.core_type<tc>, window_params = [{transform_indices = @transform_0, window_bounds = array<i64: 2, 256>}, {transform_indices = @transform_1, window_bounds = array<i64: 1, 256>}, {transform_indices = @transform_2, window_bounds = array<i64: 2, 256>}]} {
    %c0 = arith.constant 0 : index
    %c0_0 = arith.constant 0 : index
    %0 = vector.load %arg2[%c0, %c0_0] : memref<2x256xf32, #tpu.memory_space<vmem>>, vector<2x256xf32>
    %cst = arith.constant 5.65685415 : f32
    %1 = vector.broadcast %cst : f32 to vector<2x256xf32>
    %2 = arith.mulf %0, %1 : vector<2x256xf32>
    %c0_1 = arith.constant 0 : index
    %c0_2 = arith.constant 0 : index
    %3 = vector.load %arg3[%c0_1, %c0_2] : memref<1x256xf32, #tpu.memory_space<vmem>>, vector<1x256xf32>
    %4 = vector.broadcast %3 : vector<1x256xf32> to vector<2x256xf32>
    %5 = arith.addf %2, %4 : vector<2x256xf32>
    %c0_3 = arith.constant 0 : index
    %c0_4 = arith.constant 0 : index
    %6 = vector.load %arg4[%c0_3, %c0_4] : memref<2x256xf32, #tpu.memory_space<vmem>>, vector<2x256xf32>
    tpu.vector_store %arg4[%c0_3, %c0_4], %5 {strides = array<i32>} : memref<2x256xf32, #tpu.memory_space<vmem>>, vector<2x256xf32>,
    return
  }
  func.func @transform_0(%arg0: i32, %arg1: i32) -> (i32, i32) {
    %c0_i32 = arith.constant 0 : i32
    return %arg1, %arg0 : i32, i32
  }
  func.func @transform_1(%arg0: i32, %arg1: i32) -> (i32, i32) {
    %c0_i32 = arith.constant 0 : i32
    %c0_i32_0 = arith.constant 0 : i32
    return %c0_i32, %arg0 : i32, i32
  }
  func.func @transform_2(%arg0: i32, %arg1: i32) -> (i32, i32) {
    %c0_i32 = arith.constant 0 : i32
    return %arg1, %arg0 : i32, i32
  }
}

</mosaic_0001>

<bundles_post_ra>
// kernel: tpu_custom_call.1
= control target key start
LH: loop header
LB: loop body
LE: loop exit
PB: predicated region body
PF: predicated region fallthrough
CT: control target
= control target key end

     0   :  { %7 = vsyncpa [#allocation3], 0  ;;  %s178_s0 = inlined_call_operand.hbm [shape: f32[2,256], index: 0, kind: input, shape index: {}]   ;;  %s179_s1 = inlined_call_operand.hbm [shape: f32[1,256], index: 1, kind: input, shape index: {}]   ;;  %s180_s2 = inlined_call_operand.hbm [shape: f32[2,256], index: 2, kind: output, shape index: {}]  }
   0x1   :  { %8 = vsyncpa [#allocation6], 0 }
   0x2   :  { %9 = vsyncpa [#allocation4], 0  ;;  %s15_s11 = sshll.u32 %s178_s0, 4  ;;  %s151_s12 = smov [#allocation2]   ;;  %s16_s11 = int_to_ptr.hbm [resolvable:$true] %s15_s11 }
   0x3   :  { %s17_s13 = sshll.u32 %s151_s12, 4  ;;  %s26_s16 = sshll.u32 %s179_s1, 4  ;;  %s18_s13 = int_to_ptr.vmem [resolvable:$true] %s17_s13  ;;  %s27_s16 = int_to_ptr.hbm [resolvable:$true] %s26_s16 }
   0x4   :  { %20 = dma.hbm_to_vmem [thread:$0]  %s16_s11, 64, %s18_s13, [#allocation3]  }
   0x5   :  { %s152_s17 = smov [#allocation5]  }
   0x6   :  { %s28_s18 = sshll.u32 %s152_s17, 4  ;;  %s29_s18 = int_to_ptr.vmem [resolvable:$true] %s28_s18 }
   0x7   :  { %31 = dma.hbm_to_vmem [thread:$0]  %s27_s16, 32, %s29_s18, [#allocation6]  }
   0x8   :  { %145 = dma.done.wait [#allocation3], 64  }
   0x9   :  { %146 = vsyncadd [#allocation3], 4294967232 }
   0xa   :  { %147 = dma.done.wait [#allocation6], 32  }
   0xb   :  { %148 = vsyncadd [#allocation6], 4294967264  ;;  %v40_v0 = vld [vmem:[#allocation2] sm:$0xf]  ;;  %v42_v1 = vld [vmem:[#allocation5] sm:$0x3] }
   0xc   :  { %v44_v2 = vperm.slane %v42_v1, 0  ;;  %v45_v3 = vperm.slane %v42_v1, 1  ;;  %v41_v4 = vmul.f32 5.656854, %v40_v0  ;;  %vm47_vm0 = vcmask 1041408   ;;  %s153_s0 = smov [#allocation7]  }
   0xd   :  { %s57_s19 = sshll.u32 %s153_s0, 4  ;;  %s59_s21 = sshll.u32 %s180_s2, 4  ;;  %s58_s19 = int_to_ptr.vmem [resolvable:$true] %s57_s19  ;;  %s60_s21 = int_to_ptr.hbm [resolvable:$true] %s59_s21 }
   0xe   :  { %v46_v5 = vrot.slane %v45_v3, 6 }
  0x10   :  { %v48_v6 = vsel %vm47_vm0, %v44_v2, %v46_v5 }
  0x11   :  { %v50_v7 = vadd.f32 %v48_v6, %v41_v4 }
  0x13   :  { %51 = vst [vmem:[#allocation7] sm:$0xf] %v50_v7 }
  0x14   :  { %62 = dma.vmem_to_hbm [thread:$0]  %s58_s19, 64, %s60_s21, [#allocation4]  }
  0x15   :  { %149 = dma.done.wait [#allocation4], 64  }
  0x16   :  { %150 = vsyncadd [#allocation4], 4294967232 }
  0x17   :  { %67 = vsyncpa [#allocation3], 1 }
  0x18   :  { %68 = vsyncpa [#allocation6], 1 }
  0x19   :  { %69 = vsyncpa [#allocation4], 1 }

</bundles_post_ra>
